<compile_context>
chip_gen: v7x
topology: tpu7x:2x2x1
jax: 0.10.0
libtpu: 0.0.40
codegen_flags: <defaults>
</compile_context>

<pallas_src>
import jax
import jax.numpy as jnp
from jax.experimental import pallas as pl
from jax.experimental.pallas import tpu as pltpu

_LANES = 128


def _make_partial_sq_kernel(rows: int, tile_rows: int, needs_row_mask: bool):
    """Kernel: per-tile partial sum of (s - t)^2 over the sublane axis."""

    def kernel(s_ref, t_ref, out_ref):
        d = s_ref[...].astype(jnp.float32) - t_ref[...].astype(jnp.float32)
        sq = d * d

        if needs_row_mask:
            i = pl.program_id(0)
            last = pl.num_programs(0) - 1

            # Steady state: plain reduce (no iota/cmp/select on the VALU).
            @pl.when(i != last)
            def _plain():
                out_ref[...] = jnp.sum(sq, axis=0, keepdims=True)

            # Only the last (partial) tile pays for the row mask.
            @pl.when(i == last)
            def _masked():
                row_ids = i * tile_rows + jax.lax.broadcasted_iota(
                    jnp.int32, sq.shape, 0)
                masked = jnp.where(row_ids < rows, sq, 0.0)
                out_ref[...] = jnp.sum(masked, axis=0, keepdims=True)
        else:
            out_ref[...] = jnp.sum(sq, axis=0, keepdims=True)

    return kernel


def hint_loss(f_s, f_t, *, tile_rows: int | None = None):
    """Pallas TPU forward pass of HintLoss: mean((f_s - f_t) ** 2)."""
    assert f_s.shape == f_t.shape, (f_s.shape, f_t.shape)

    total = 1
    for dim in f_s.shape:
        total *= int(dim)
    assert total > 0

    flat_s = f_s.reshape(-1)
    flat_t = f_t.reshape(-1)

    item_s = jnp.dtype(f_s.dtype).itemsize
    item_t = jnp.dtype(f_t.dtype).itemsize

    # 128-aligned prefix goes through the kernel; the <128-element tail is a
    # trivial wrapper-side sum (avoids padding copies of both full tensors).
    main = (total // _LANES) * _LANES
    rem = total - main

    sq_sum = jnp.float32(0.0)
    if rem:
        tail_s = flat_s[main:].astype(jnp.float32)
        tail_t = flat_t[main:].astype(jnp.float32)
        sq_sum = jnp.sum((tail_s - tail_t) ** 2)

    if main:
        rows = main // _LANES
        fs = flat_s if rem == 0 else flat_s[:main]
        ft = flat_t if rem == 0 else flat_t[:main]
        fs = fs.reshape(rows, _LANES)
        ft = ft.reshape(rows, _LANES)

        # Dtype-aware default tile: ~16 MiB for 2 inputs x 2 pipeline buffers
        # (8192 rows f32, 16384 rows bf16). Fits the 32 MiB scoped-VMEM limit
        # and v7x's 64 MiB physical VMEM with headroom.
        if tile_rows is None:
            tile_rows = (16 * 1024 * 1024) // (2 * _LANES * (item_s + item_t))
        tile_rows = max(1, int(tile_rows))

        if rows <= tile_rows:
            tile_r = rows                      # single tile: full dim is legal
        else:
            # Sublane packing: 8 for 4-byte, 16 for 2-byte, 32 for 1-byte.
            packing = max(max(8, 32 // item_s), max(8, 32 // item_t))
            tile_r = max(packing, (tile_rows // packing) * packing)
            tile_r = min(tile_r, rows)
        grid = -(-rows // tile_r)
        needs_row_mask = (rows % tile_r) != 0

        kernel = _make_partial_sq_kernel(rows, tile_r, needs_row_mask)

        partials = pl.pallas_call(
            kernel,
            out_shape=jax.ShapeDtypeStruct((grid, _LANES), jnp.float32),
            grid=(grid,),
            in_specs=[
                pl.BlockSpec((tile_r, _LANES), lambda i: (i, 0)),
                pl.BlockSpec((tile_r, _LANES), lambda i: (i, 0)),
            ],
            out_specs=pl.BlockSpec((1, _LANES), lambda i: (i, 0)),
            compiler_params=pltpu.CompilerParams(
                # Per-tile partial outputs -> no cross-step state, so the grid
                # axis is parallel (shards tiles across both v7x TensorCores).
                dimension_semantics=("parallel",),
                vmem_limit_bytes=32 * 1024 * 1024,
            ),
        )(fs, ft)

        sq_sum = sq_sum + jnp.sum(partials)

    return sq_sum * jnp.float32(1.0 / total)   # compile-time 1/total constant


def _hint_loss_reference(f_s, f_t):
    a = f_s.astype(jnp.float32)
    b = f_t.astype(jnp.float32)
    return jnp.mean((a - b) ** 2)


if __name__ == "__main__":
    key = jax.random.PRNGKey(0)
    k1, k2, k3, k4 = jax.random.split(key, 4)

    # Case 1: FitNets-style feature maps [N, C, H, W] = [2, 4, 16, 16]
    # (128-aligned, single tile, pure kernel path).
    f_s = jax.random.normal(k1, (2, 4, 16, 16), dtype=jnp.float32)
    f_t = jax.random.normal(k2, (2, 4, 16, 16), dtype=jnp.float32)
    got = jax.block_until_ready(hint_loss(f_s, f_t))
    want = jax.block_until_ready(_hint_loss_reference(f_s, f_t))
    assert jnp.allclose(got, want, rtol=1e-5, atol=1e-6), (got, want)

    # Case 2: 135 elements (not a multiple of 128): 128-element prefix through
    # the kernel, 7-element tail summed in the wrapper (no jnp.pad copies).
    a = jax.random.normal(k3, (3, 5, 9), dtype=jnp.float32)
    b = jax.random.normal(k4, (3, 5, 9), dtype=jnp.float32)
    got2 = jax.block_until_ready(hint_loss(a, b))
    want2 = jax.block_until_ready(_hint_loss_reference(a, b))
    assert jnp.allclose(got2, want2, rtol=1e-5, atol=1e-6), (got2, want2)

    # Case 3: multi-tile parallel grid with a masked partial last tile (f32).
    ka, kb = jax.random.split(k1)
    c = jax.random.normal(ka, (20, 128), dtype=jnp.float32)
    d = jax.random.normal(kb, (20, 128), dtype=jnp.float32)
    got3 = jax.block_until_ready(hint_loss(c, d, tile_rows=8))
    want3 = jax.block_until_ready(_hint_loss_reference(c, d))
    assert jnp.allclose(got3, want3, rtol=1e-5, atol=1e-6), (got3, want3)

    # Case 4: bf16, multi-tile; user tile_rows=8 is rounded up to the bf16
    # sublane packing (16) and the partial last tile is masked.
    e = jax.random.normal(kb, (40, 128), dtype=jnp.bfloat16)
    f = jax.random.normal(ka, (40, 128), dtype=jnp.bfloat16)
    got4 = jax.block_until_ready(hint_loss(e, f, tile_rows=8))
    want4 = jax.block_until_ready(_hint_loss_reference(e, f))
    assert jnp.allclose(got4, want4, rtol=1e-5, atol=1e-5), (got4, want4)

    # Case 5: fewer than 128 elements — pure wrapper tail fallback.
    g = jax.random.normal(k3, (3, 5, 7), dtype=jnp.float32)
    h = jax.random.normal(k4, (3, 5, 7), dtype=jnp.float32)
    got5 = jax.block_until_ready(hint_loss(g, h))
    want5 = jax.block_until_ready(_hint_loss_reference(g, h))
    assert jnp.allclose(got5, want5, rtol=1e-5, atol=1e-6), (got5, want5)

    print("KERNEL_OK")
</pallas_src>

<mosaic_0001>
module attributes {stable_mosaic.version = 11 : i64} {
  func.func @kernel(%arg0: i32, %arg1: memref<16x128xf32, #tpu.memory_space<vmem>>, %arg2: memref<16x128xf32, #tpu.memory_space<vmem>>, %arg3: memref<1x128xf32, #tpu.memory_space<vmem>>) attributes {dimension_semantics = [#tpu.dimension_semantics<parallel>], iteration_bounds = array<i64: 1>, scalar_prefetch = 0 : i64, scratch_operands = 0 : i64, tpu.core_type = #tpu.core_type<tc>, window_params = [{transform_indices = @transform_0, window_bounds = array<i64: 16, 128>}, {transform_indices = @transform_1, window_bounds = array<i64: 16, 128>}, {transform_indices = @transform_2, window_bounds = array<i64: 1, 128>}]} {
    %c0 = arith.constant 0 : index
    %c0_0 = arith.constant 0 : index
    %0 = vector.load %arg1[%c0, %c0_0] : memref<16x128xf32, #tpu.memory_space<vmem>>, vector<16x128xf32>
    %c0_1 = arith.constant 0 : index
    %c0_2 = arith.constant 0 : index
    %1 = vector.load %arg2[%c0_1, %c0_2] : memref<16x128xf32, #tpu.memory_space<vmem>>, vector<16x128xf32>
    %2 = arith.subf %0, %1 : vector<16x128xf32>
    %3 = arith.mulf %2, %2 : vector<16x128xf32>
    %cst = arith.constant dense<0.000000e+00> : vector<128xf32>
    %4 = vector.multi_reduction <add>, %3, %cst [0] : vector<16x128xf32> to vector<128xf32>
    %5 = vector.shape_cast %4 : vector<128xf32> to vector<1x128xf32>
    %c0_3 = arith.constant 0 : index
    %c0_4 = arith.constant 0 : index
    %6 = vector.load %arg3[%c0_3, %c0_4] : memref<1x128xf32, #tpu.memory_space<vmem>>, vector<1x128xf32>
    tpu.vector_store %arg3[%c0_3, %c0_4], %5 {strides = array<i32>} : memref<1x128xf32, #tpu.memory_space<vmem>>, vector<1x128xf32>,
    return
  }
  func.func @transform_0(%arg0: i32) -> (i32, i32) {
    %c0_i32 = arith.constant 0 : i32
    %c0_i32_0 = arith.constant 0 : i32
    return %arg0, %c0_i32 : i32, i32
  }
  func.func @transform_1(%arg0: i32) -> (i32, i32) {
    %c0_i32 = arith.constant 0 : i32
    %c0_i32_0 = arith.constant 0 : i32
    return %arg0, %c0_i32 : i32, i32
  }
  func.func @transform_2(%arg0: i32) -> (i32, i32) {
    %c0_i32 = arith.constant 0 : i32
    %c0_i32_0 = arith.constant 0 : i32
    return %arg0, %c0_i32 : i32, i32
  }
}

</mosaic_0001>

<bundles_post_ra>
// kernel: tpu_custom_call.1
= control target key start
LH: loop header
LB: loop body
LE: loop exit
PB: predicated region body
PF: predicated region fallthrough
CT: control target
= control target key end

     0   :  { %7 = vsyncpa [#allocation3], 0  ;;  %s205_s0 = inlined_call_operand.hbm [shape: f32[16,128], index: 0, kind: input, shape index: {}]   ;;  %s206_s1 = inlined_call_operand.hbm [shape: f32[16,128], index: 1, kind: input, shape index: {}]   ;;  %s207_s2 = inlined_call_operand.hbm [shape: f32[1,128], index: 2, kind: output, shape index: {}]  }
   0x1   :  { %8 = vsyncpa [#allocation6], 0 }
   0x2   :  { %9 = vsyncpa [#allocation4], 0  ;;  %s149_s9 = smov [#allocation2]   ;;  %s77_s13 = scalar_lea.hbm %s205_s0, 256 }
   0x3   :  { %s15_s10 = sshll.u32 %s149_s9, 4  ;;  %p78_p0 = scmp.ne.s32.totalorder %s205_s0, %s77_s13  ;;  %s16_s10 = int_to_ptr.vmem [resolvable:$true] %s15_s10 }
   0x4   :  { %p81_p1 = scmp.lt.u32.totalorder %s77_s13, %s205_s0 }
   0x6   :  { %p83_p2 = pnand %p81_p1, %p78_p0 }
   0x8   :  { %86 = shalt.err (!%p83_p2)
}
   0x9   :  { %s87_s18 = scalar_lea.vmem %s16_s10, 256  ;;  %p92_p4 = scmp.lt.s32.totalorder %s16_s10, %s16_s10 }
   0xa   :  { %p88_p3 = scmp.ne.s32.totalorder %s16_s10, %s87_s18  ;;  %p93_p5 = scmp.lt.s32.totalorder %s87_s18, %s87_s18 }
   0xc   :  { %p94_p6 = por %p93_p5, %p92_p4 }
   0xe   :  { %p95_p7 = pnand %p94_p6, %p88_p3 }
  0x10   :  { %98 = shalt.err (!%p95_p7)
}
  0x11   :  { %s150_s19 = smov 128   ;;  %s151_s20 = smov 8  }
  0x12   :  { %21 = dma.hbm_to_vmem [thread:$0]  %s205_s0, 256, %s16_s10, [#allocation3], %s150_s19, %s150_s19, %s151_s20  }
  0x13   :  { %s152_s23 = smov [#allocation5]   ;;  %s99_s27 = scalar_lea.hbm %s206_s1, 256 }
  0x14   :  { %s27_s24 = sshll.u32 %s152_s23, 4  ;;  %p100_p8 = scmp.ne.s32.totalorder %s206_s1, %s99_s27  ;;  %s28_s24 = int_to_ptr.vmem [resolvable:$true] %s27_s24 }
  0x15   :  { %p103_p9 = scmp.lt.u32.totalorder %s99_s27, %s206_s1 }
  0x17   :  { %p105_p10 = pnand %p103_p9, %p100_p8 }
  0x19   :  { %108 = shalt.err (!%p105_p10)
}
  0x1a   :  { %s109_s4 = scalar_lea.vmem %s28_s24, 256  ;;  %p114_p12 = scmp.lt.s32.totalorder %s28_s24, %s28_s24 }
  0x1b   :  { %p110_p11 = scmp.ne.s32.totalorder %s28_s24, %s109_s4  ;;  %p115_p13 = scmp.lt.s32.totalorder %s109_s4, %s109_s4 }
  0x1d   :  { %p116_p0 = por %p115_p13, %p114_p12 }
  0x1f   :  { %p117_p1 = pnand %p116_p0, %p110_p11 }
  0x21   :  { %120 = shalt.err (!%p117_p1)
}
  0x22   :  { %33 = dma.hbm_to_vmem [thread:$0]  %s206_s1, 256, %s28_s24, [#allocation6], %s150_s19, %s150_s19, %s151_s20  }
  0x23   :  { %143 = dma.done.wait [#allocation3], 256  }
  0x24   :  { %144 = vsyncadd [#allocation3], 4294967040 }
  0x25   :  { %145 = dma.done.wait [#allocation6], 256  }
  0x26   :  { %146 = vsyncadd [#allocation6], 4294967040  ;;  %v40_v0 = vld [vmem:[#allocation2] sm:$0xff]  ;;  %v41_v1 = vld [vmem:[#allocation2 + $0x8] sm:$0xff]  ;;  %s153_s6 = smov [#allocation7]  }
  0x27   :  { %v42_v2 = vld [vmem:[#allocation5] sm:$0xff]  ;;  %v43_v3 = vld [vmem:[#allocation5 + $0x8] sm:$0xff]  ;;  %s62_s7 = sshll.u32 %s153_s6, 4  ;;  %s63_s7 = int_to_ptr.vmem [resolvable:$true] %s62_s7 }
  0x28   :  { %v44_v4 = vsub.f32 %v40_v0, %v42_v2  ;;  %v45_v5 = vsub.f32 %v41_v1, %v43_v3  ;;  %s121_s1 = scalar_lea.vmem %s63_s7, 16  ;;  %s125_s8 = scalar_lea.vmem %s63_s7, 32 }
  0x29   :  { %p122_p2 = scmp.ne.s32.totalorder %s63_s7, %s121_s1  ;;  %p126_p3 = scmp.lt.s32.totalorder %s63_s7, %s63_s7 }
  0x2a   :  { %v46_v6 = vmul.f32 %v44_v4, %v44_v4  ;;  %v47_v7 = vmul.f32 %v45_v5, %v45_v5  ;;  %p127_p4 = scmp.lt.s32.totalorder %s125_s8, %s121_s1 }
  0x2c   :  { %v48_v8 = vadd.f32 %v47_v7, %v46_v6  ;;  %p128_p5 = por %p127_p4, %p126_p3 }
  0x2e   :  { %v49_v9 = vrot.slane %v48_v8, 4  ;;  %p129_p6 = pnand %p128_p5, %p122_p2 }
  0x30   :  { %v50_v10 = vadd.f32 %v49_v9, %v48_v8 }
  0x32   :  { %v51_v11 = vrot.slane %v50_v10, 2 }
  0x34   :  { %v52_v12 = vadd.f32 %v51_v11, %v50_v10 }
  0x36   :  { %v53_v13 = vrot.slane %v52_v12, 1 }
  0x38   :  { %v54_v14 = vadd.f32 %v53_v13, %v52_v12 }
  0x3a   :  { %55 = vst [vmem:[#allocation7] sm:$0x1] %v54_v14 }
  0x3b   :  { %132 = shalt.err (!%p129_p6)
}
  0x3c   :  { %s133_s11 = scalar_lea.hbm %s207_s2, 16 }
  0x3d   :  { %p134_p7 = scmp.ne.s32.totalorder %s207_s2, %s133_s11  ;;  %p137_p8 = scmp.lt.u32.totalorder %s133_s11, %s207_s2 }
  0x3f   :  { %p139_p9 = pnand %p137_p8, %p134_p7 }
  0x41   :  { %142 = shalt.err (!%p139_p9)
}
  0x42   :  { %65 = dma.vmem_to_hbm [thread:$0]  %s63_s7, 16, %s207_s2, [#allocation4]  }
  0x43   :  { %147 = dma.done.wait [#allocation4], 16  }
  0x44   :  { %148 = vsyncadd [#allocation4], 4294967280 }
  0x45   :  { %69 = vsyncpa [#allocation3], 1 }
  0x46   :  { %70 = vsyncpa [#allocation6], 1 }
  0x47   :  { %71 = vsyncpa [#allocation4], 1 }

</bundles_post_ra>
